<compile_context>
chip_gen: v5e
topology: v5e:2x2
jax: 0.10.0
libtpu: 0.0.40
codegen_flags: <defaults>
</compile_context>

<pallas_src>
import functools
import math

import jax
import jax.numpy as jnp
from jax import lax
from jax.experimental import pallas as pl
from jax.experimental.pallas import tpu as pltpu

REGRESSION_WEIGHT = 1.0
CLASSIFICATION_WEIGHT = 1.0

_LANE = 128
_SUBLANE = 8
_MAX_TILE_ROWS = 8192   # bounds the in-kernel f32 temporaries (exp/lse/sq)


def _round_up(x, m):
    return ((x + m - 1) // m) * m


def _lcm(a, b):
    return a * b // math.gcd(a, b)


def _vmem_plan():
    """Returns (double-buffered-input budget, vmem_limit_bytes) per chip gen."""
    physical = None
    try:
        info = pltpu.get_tpu_info()
        physical = int(getattr(info, "vmem_capacity_bytes", 0)) or None
    except Exception:
        physical = None
    if physical is None or physical <= 64 * 1024 * 1024:
        # v7x-class (64 MiB per TC) or unknown: conservative but still 2.5x the
        # old 8 MiB budget; vmem_limit leaves headroom under 64 MiB physical.
        return 20 * 1024 * 1024, 44 * 1024 * 1024
    # v5e / v6e: 128 MiB physical VMEM.
    return 40 * 1024 * 1024, 80 * 1024 * 1024


def _combined_loss_kernel(reg_pred_ref, reg_tgt_ref, logits_ref, labels_ref,
                          out_ref, *, batch, n_reg, block_rows, reg_block_rows,
                          mask_partial, reg_lane_dense):
    f32 = jnp.float32

    # ---- regression: sum of squared differences over this tile ----
    diff = reg_pred_ref[...].astype(f32) - reg_tgt_ref[...].astype(f32)
    sq = diff * diff

    # ---- classification: per-row (logsumexp - target_logit) ----
    logits = logits_ref[...].astype(f32)
    tb, c = logits.shape
    m = jnp.max(logits, axis=-1, keepdims=True)                           # (tb,1)
    lse = jnp.log(jnp.sum(jnp.exp(logits - m), axis=-1, keepdims=True)) + m
    class_ids = lax.broadcasted_iota(jnp.int32, (tb, c), 1)               # (tb,c)
    # compare+select instead of one-hot cast+multiply.
    # NOTE: assumes labels are valid, i.e. in [0, C) (no ignore_index).
    tgt_logit = jnp.sum(jnp.where(class_ids == labels_ref[...], logits, 0.0),
                        axis=-1, keepdims=True)                           # (tb,1)
    per_row = lse - tgt_logit                                             # (tb,1)

    if mask_partial:
        # Ragged last tile: padded rows hold stale VMEM garbage.  The
        # jnp.where select does not propagate NaN/Inf from the unselected
        # branch, so masking after the (cheap, EUP/VPU) math is correct.
        row_ids = lax.broadcasted_iota(jnp.int32, (tb, 1), 0)
        valid_row = (pl.program_id(0) * block_rows + row_ids) < batch
        per_row = jnp.where(valid_row, per_row, 0.0)
        if reg_lane_dense:
            tr, lanes = sq.shape
            r_ids = lax.broadcasted_iota(jnp.int32, (tr, lanes), 0)
            l_ids = lax.broadcasted_iota(jnp.int32, (tr, lanes), 1)
            flat = (pl.program_id(0) * reg_block_rows + r_ids) * lanes + l_ids
            sq = jnp.where(flat < n_reg, sq, 0.0)
        else:
            sq = jnp.where(valid_row, sq, 0.0)   # (tb,1) mask broadcasts (tb,D)

    reg_sum = jnp.sum(sq)
    cls_sum = jnp.sum(per_row)

    # Lane-dense (8,128) output tile: [0,0] = reg partial, [0,1] = cls partial.
    lane = lax.broadcasted_iota(jnp.int32, (_SUBLANE, _LANE), 1)
    out_ref[0] = jnp.where(lane == 0, reg_sum, cls_sum)


def combined_loss(outputs, targets, *,
                  regression_weight=REGRESSION_WEIGHT,
                  classification_weight=CLASSIFICATION_WEIGHT,
                  _block_rows=None):
    """Mirrors CombinedLoss.forward.

    outputs: dict with 'regression' (B,D) and 'classification' (B,C) logits.
    targets: tuple (regression_targets (B,D), classification_targets (B,) int).
    Returns (total_loss, losses_dict).
    """
    reg_pred = outputs["regression"]
    logits = outputs["classification"]
    reg_tgt, cls_tgt = targets

    B, D = reg_pred.shape
    Bc, C = logits.shape
    assert B == Bc, "regression / classification batch mismatch"
    labels = cls_tgt.astype(jnp.int32).reshape(B, 1)   # (B,1) for lane broadcast

    reg_isz = jnp.dtype(reg_pred.dtype).itemsize
    tgt_isz = jnp.dtype(reg_tgt.dtype).itemsize
    log_isz = jnp.dtype(logits.dtype).itemsize
    n_reg = B * D

    # ---- packed-dtype sublane multiples (8 for f32, 16 for bf16, 32 for i8) --
    sub_logits = max(_SUBLANE, 32 // log_isz)
    sub_reg = max(_SUBLANE, 32 // min(reg_isz, tgt_isz))

    # ---- lane-dense regression layout: zero-copy reshape to (B*D/128, 128) ---
    reg_lane_dense = (n_reg % _LANE == 0)
    lane_align = _SUBLANE
    if reg_lane_dense:
        need = _LANE * sub_reg                 # tb*D must be a multiple of this
        lane_align = need // math.gcd(need, D)
        if lane_align > 4096:                  # awkward D: relax packing to 8
            need = _LANE * _SUBLANE
            lane_align = need // math.gcd(need, D)
        if lane_align > 4096:
            reg_lane_dense = False
            lane_align = _SUBLANE
    align = _lcm(sub_logits, lane_align) if reg_lane_dense \
        else _lcm(sub_logits, sub_reg)

    # ---- VMEM-budget-driven batch tile, using native-dtype footprints --------
    budget, vmem_limit = _vmem_plan()
    if reg_lane_dense:
        reg_row_bytes = (reg_isz + tgt_isz) * D              # no lane padding
    else:
        reg_row_bytes = (reg_isz + tgt_isz) * _round_up(D, _LANE)
    row_bytes = (reg_row_bytes
                 + log_isz * _round_up(C, _LANE)
                 + 4 * _LANE)                  # (tb,1) i32 labels pad to a lane row
    tb = min(_MAX_TILE_ROWS, budget // (2 * row_bytes))
    tb = max(align, (tb // align) * align)
    if _block_rows is not None:
        tb = _block_rows                       # test hook; must respect `align`

    if B <= tb:
        # Whole batch fits one step; split in two so both v7x TensorCores get
        # work (one extra ~0.35us step on 1-TC v5e/v6e, negligible).
        if _block_rows is None and B >= 2 * align:
            tb = _round_up(pl.cdiv(B, 2), align)
            if tb >= B:
                tb = B
        else:
            tb = B
    grid = pl.cdiv(B, tb)
    mask_partial = (grid * tb != B)

    if reg_lane_dense:
        R = n_reg // _LANE
        tr = (tb * D) // _LANE                 # == R when grid == 1 (tb == B)
        reg_pred_in = reg_pred.reshape(R, _LANE)
        reg_tgt_in = reg_tgt.reshape(R, _LANE)
        reg_pred_spec = pl.BlockSpec((tr, _LANE), lambda i: (i, 0))
        reg_tgt_spec = pl.BlockSpec((tr, _LANE), lambda i: (i, 0))
    else:
        tr = 0
        reg_pred_in = reg_pred
        reg_tgt_in = reg_tgt
        reg_pred_spec = pl.BlockSpec((tb, D), lambda i: (i, 0))
        reg_tgt_spec = pl.BlockSpec((tb, D), lambda i: (i, 0))

    kernel = functools.partial(
        _combined_loss_kernel, batch=B, n_reg=n_reg, block_rows=tb,
        reg_block_rows=tr, mask_partial=mask_partial,
        reg_lane_dense=reg_lane_dense)

    cost = pl.CostEstimate(
        flops=int(3 * n_reg + 6 * B * C),
        transcendentals=int(B * C + B),
        bytes_accessed=int(n_reg * (reg_isz + tgt_isz) + B * C * log_isz
                           + B * 4 + grid * _SUBLANE * _LANE * 4),
    )

    # TODO(synk): verify plain "parallel" shards a 1-D grid across v7x's two
    # TensorCores; otherwise switch to pltpu.CORE_PARALLEL on a leading axis.
    partials = pl.pallas_call(
        kernel,
        out_shape=jax.ShapeDtypeStruct((grid, _SUBLANE, _LANE), jnp.float32),
        grid=(grid,),
        in_specs=[
            reg_pred_spec,
            reg_tgt_spec,
            pl.BlockSpec((tb, C), lambda i: (i, 0)),
            pl.BlockSpec((tb, 1), lambda i: (i, 0)),
        ],
        out_specs=pl.BlockSpec((1, _SUBLANE, _LANE), lambda i: (i, 0, 0)),
        compiler_params=pltpu.CompilerParams(
            dimension_semantics=("parallel",),
            vmem_limit_bytes=vmem_limit),
        cost_estimate=cost,
    )(reg_pred_in, reg_tgt_in, logits, labels)

    reg_loss = jnp.sum(partials[:, 0, 0]) / float(n_reg)   # MSELoss (mean over elems)
    cls_loss = jnp.sum(partials[:, 0, 1]) / float(B)       # CrossEntropyLoss (mean)
    total = regression_weight * reg_loss + classification_weight * cls_loss
    # torch returns .item() floats in the dict; here we return JAX scalars.
    losses = {"total": total, "regression": reg_loss, "classification": cls_loss}
    return total, losses


def _reference(reg_pred, reg_tgt, logits, labels):
    reg = jnp.mean((reg_pred.astype(jnp.float32) - reg_tgt.astype(jnp.float32)) ** 2)
    lg = logits.astype(jnp.float32)
    lse = jax.scipy.special.logsumexp(lg, axis=-1)
    cls = jnp.mean(lse - lg[jnp.arange(lg.shape[0]), labels])
    total = REGRESSION_WEIGHT * reg + CLASSIFICATION_WEIGHT * cls
    return total, reg, cls


if __name__ == "__main__":
    # --- Test 1: small shape (single grid step, lane-dense regression) -------
    k1, k2, k3, k4 = jax.random.split(jax.random.PRNGKey(0), 4)
    B, D, C = 8, 32, 16
    reg_out = jax.random.normal(k1, (B, D), dtype=jnp.float32)
    reg_tgt = jax.random.normal(k2, (B, D), dtype=jnp.float32)
    logits = jax.random.normal(k3, (B, C), dtype=jnp.float32)
    labels = jax.random.randint(k4, (B,), 0, C, dtype=jnp.int32)

    total, losses = combined_loss(
        {"regression": reg_out, "classification": logits}, (reg_tgt, labels))
    jax.block_until_ready(total)
    ref_total, ref_reg, ref_cls = _reference(reg_out, reg_tgt, logits, labels)
    assert jnp.allclose(losses["regression"], ref_reg, atol=1e-5, rtol=1e-5)
    assert jnp.allclose(losses["classification"], ref_cls, atol=1e-5, rtol=1e-5)
    assert jnp.allclose(total, ref_total, atol=1e-5, rtol=1e-5)

    # --- Test 2: multi-block ragged grid, bf16 activations (lane-dense
    #     regression with flat-index tail masking, in-kernel casts) -----------
    k5, k6, k7, k8 = jax.random.split(jax.random.PRNGKey(1), 4)
    B2, D2, C2 = 300, 32, 16
    reg_out2 = jax.random.normal(k5, (B2, D2), dtype=jnp.bfloat16)
    reg_tgt2 = jax.random.normal(k6, (B2, D2), dtype=jnp.bfloat16)
    logits2 = jax.random.normal(k7, (B2, C2), dtype=jnp.bfloat16)
    labels2 = jax.random.randint(k8, (B2,), 0, C2, dtype=jnp.int32)

    total2, losses2 = combined_loss(
        {"regression": reg_out2, "classification": logits2},
        (reg_tgt2, labels2), _block_rows=128)
    jax.block_until_ready(total2)
    ref_total2, ref_reg2, ref_cls2 = _reference(reg_out2, reg_tgt2, logits2, labels2)
    assert jnp.allclose(losses2["regression"], ref_reg2, atol=1e-3, rtol=1e-3)
    assert jnp.allclose(losses2["classification"], ref_cls2, atol=1e-3, rtol=1e-3)
    assert jnp.allclose(total2, ref_total2, atol=1e-3, rtol=1e-3)

    # --- Test 3: auto tile sizing + two-way split for megacore ---------------
    k9, k10, k11, k12 = jax.random.split(jax.random.PRNGKey(2), 4)
    B3, D3, C3 = 2048, 32, 16
    reg_out3 = jax.random.normal(k9, (B3, D3), dtype=jnp.float32)
    reg_tgt3 = jax.random.normal(k10, (B3, D3), dtype=jnp.float32)
    logits3 = jax.random.normal(k11, (B3, C3), dtype=jnp.float32)
    labels3 = jax.random.randint(k12, (B3,), 0, C3, dtype=jnp.int32)

    total3, losses3 = combined_loss(
        {"regression": reg_out3, "classification": logits3},
        (reg_tgt3, labels3))
    jax.block_until_ready(total3)
    ref_total3, ref_reg3, ref_cls3 = _reference(reg_out3, reg_tgt3, logits3, labels3)
    assert jnp.allclose(losses3["regression"], ref_reg3, atol=1e-5, rtol=1e-4)
    assert jnp.allclose(losses3["classification"], ref_cls3, atol=1e-5, rtol=1e-4)
    assert jnp.allclose(total3, ref_total3, atol=1e-5, rtol=1e-4)

    print("KERNEL_OK")
</pallas_src>

<mosaic_0001>
module attributes {stable_mosaic.version = 11 : i64} {
  func.func @_combined_loss_kernel(%arg0: i32, %arg1: memref<2x128xf32, #tpu.memory_space<vmem>>, %arg2: memref<2x128xf32, #tpu.memory_space<vmem>>, %arg3: memref<8x16xf32, #tpu.memory_space<vmem>>, %arg4: memref<8x1xi32, #tpu.memory_space<vmem>>, %arg5: memref<1x8x128xf32, #tpu.memory_space<vmem>>) attributes {dimension_semantics = [#tpu.dimension_semantics<parallel>], iteration_bounds = array<i64: 1>, scalar_prefetch = 0 : i64, scratch_operands = 0 : i64, tpu.core_type = #tpu.core_type<tc>, window_params = [{transform_indices = @transform_0, window_bounds = array<i64: 2, 128>}, {transform_indices = @transform_1, window_bounds = array<i64: 2, 128>}, {transform_indices = @transform_2, window_bounds = array<i64: 8, 16>}, {transform_indices = @transform_3, window_bounds = array<i64: 8, 1>}, {transform_indices = @transform_4, window_bounds = array<i64: 1, 8, 128>}]} {
    %c0 = arith.constant 0 : index
    %c0_0 = arith.constant 0 : index
    %0 = vector.load %arg1[%c0, %c0_0] : memref<2x128xf32, #tpu.memory_space<vmem>>, vector<2x128xf32>
    %c0_1 = arith.constant 0 : index
    %c0_2 = arith.constant 0 : index
    %1 = vector.load %arg2[%c0_1, %c0_2] : memref<2x128xf32, #tpu.memory_space<vmem>>, vector<2x128xf32>
    %2 = arith.subf %0, %1 : vector<2x128xf32>
    %3 = arith.mulf %2, %2 : vector<2x128xf32>
    %c0_3 = arith.constant 0 : index
    %c0_4 = arith.constant 0 : index
    %4 = vector.load %arg3[%c0_3, %c0_4] : memref<8x16xf32, #tpu.memory_space<vmem>>, vector<8x16xf32>
    %cst = arith.constant dense<0xFF800000> : vector<8xf32>
    %5 = vector.multi_reduction <maximumf>, %4, %cst [1] : vector<8x16xf32> to vector<8xf32>
    %6 = vector.shape_cast %5 : vector<8xf32> to vector<8x1xf32>
    %7 = vector.broadcast %6 : vector<8x1xf32> to vector<8x16xf32>
    %8 = arith.subf %4, %7 : vector<8x16xf32>
    %9 = math.exp %8 : vector<8x16xf32>
    %cst_5 = arith.constant dense<0.000000e+00> : vector<8xf32>
    %10 = vector.multi_reduction <add>, %9, %cst_5 [1] : vector<8x16xf32> to vector<8xf32>
    %11 = vector.shape_cast %10 : vector<8xf32> to vector<8x1xf32>
    %12 = math.log %11 : vector<8x1xf32>
    %13 = arith.addf %12, %6 : vector<8x1xf32>
    %14 = tpu.iota {dimensions = array<i32: 1>} : vector<8x16xi32>
    %c0_6 = arith.constant 0 : index
    %c0_7 = arith.constant 0 : index
    %15 = vector.load %arg4[%c0_6, %c0_7] : memref<8x1xi32, #tpu.memory_space<vmem>>, vector<8x1xi32>
    %16 = vector.broadcast %15 : vector<8x1xi32> to vector<8x16xi32>
    %17 = arith.cmpi eq, %14, %16 : vector<8x16xi32>
    %cst_8 = arith.constant 0.000000e+00 : f32
    %18 = vector.broadcast %cst_8 : f32 to vector<8x16xf32>
    %19 = arith.select %17, %4, %18 : vector<8x16xi1>, vector<8x16xf32>
    %cst_9 = arith.constant dense<0.000000e+00> : vector<8xf32>
    %20 = vector.multi_reduction <add>, %19, %cst_9 [1] : vector<8x16xf32> to vector<8xf32>
    %21 = vector.shape_cast %20 : vector<8xf32> to vector<8x1xf32>
    %22 = arith.subf %13, %21 : vector<8x1xf32>
    %23 = vector.shape_cast %3 : vector<2x128xf32> to vector<1x2x128xf32>
    %cst_10 = arith.constant dense<0.000000e+00> : vector<1xf32>
    %24 = vector.multi_reduction <add>, %23, %cst_10 [1, 2] : vector<1x2x128xf32> to vector<1xf32>
    %25 = vector.shape_cast %24 : vector<1xf32> to vector<1x1x1xf32>
    %26 = vector.extract %25[0, 0, 0] : f32 from vector<1x1x1xf32>
    %27 = vector.shape_cast %22 : vector<8x1xf32> to vector<1x8x1xf32>
    %cst_11 = arith.constant dense<0.000000e+00> : vector<1xf32>
    %28 = vector.multi_reduction <add>, %27, %cst_11 [1, 2] : vector<1x8x1xf32> to vector<1xf32>
    %29 = vector.shape_cast %28 : vector<1xf32> to vector<1x1x1xf32>
    %30 = vector.extract %29[0, 0, 0] : f32 from vector<1x1x1xf32>
    %31 = tpu.iota {dimensions = array<i32: 1>} : vector<8x128xi32>
    %c0_i32 = arith.constant 0 : i32
    %32 = vector.broadcast %c0_i32 : i32 to vector<8x128xi32>
    %33 = arith.cmpi eq, %31, %32 : vector<8x128xi32>
    %34 = vector.broadcast %26 : f32 to vector<8x128xf32>
    %35 = vector.broadcast %30 : f32 to vector<8x128xf32>
    %36 = arith.select %33, %34, %35 : vector<8x128xi1>, vector<8x128xf32>
    %c0_12 = arith.constant 0 : index
    %c0_13 = arith.constant 0 : index
    %c0_14 = arith.constant 0 : index
    %37 = vector.load %arg5[%c0_12, %c0_13, %c0_14] : memref<1x8x128xf32, #tpu.memory_space<vmem>>, vector<1x8x128xf32>
    %38 = vector.shape_cast %37 : vector<1x8x128xf32> to vector<8x128xf32>
    %39 = vector.shape_cast %36 : vector<8x128xf32> to vector<1x8x128xf32>
    tpu.vector_store %arg5[%c0_12, %c0_13, %c0_14], %39 {strides = array<i32>} : memref<1x8x128xf32, #tpu.memory_space<vmem>>, vector<1x8x128xf32>,
    return
  }
  func.func @transform_0(%arg0: i32) -> (i32, i32) {
    %c0_i32 = arith.constant 0 : i32
    %c0_i32_0 = arith.constant 0 : i32
    return %arg0, %c0_i32 : i32, i32
  }
  func.func @transform_1(%arg0: i32) -> (i32, i32) {
    %c0_i32 = arith.constant 0 : i32
    %c0_i32_0 = arith.constant 0 : i32
    return %arg0, %c0_i32 : i32, i32
  }
  func.func @transform_2(%arg0: i32) -> (i32, i32) {
    %c0_i32 = arith.constant 0 : i32
    %c0_i32_0 = arith.constant 0 : i32
    return %arg0, %c0_i32 : i32, i32
  }
  func.func @transform_3(%arg0: i32) -> (i32, i32) {
    %c0_i32 = arith.constant 0 : i32
    %c0_i32_0 = arith.constant 0 : i32
    return %arg0, %c0_i32 : i32, i32
  }
  func.func @transform_4(%arg0: i32) -> (i32, i32, i32) {
    %c0_i32 = arith.constant 0 : i32
    %c0_i32_0 = arith.constant 0 : i32
    %c0_i32_1 = arith.constant 0 : i32
    return %arg0, %c0_i32, %c0_i32_0 : i32, i32, i32
  }
}

</mosaic_0001>

<bundles_post_ra>
// kernel: tpu_custom_call.1
= control target key start
LH: loop header
LB: loop body
LE: loop exit
PB: predicated region body
PF: predicated region fallthrough
CT: control target
= control target key end

     0   :  { %9 = vsyncpa [#allocation3], 0  ;;  %s216_s0 = inlined_call_operand.vmem [shape: f32[2,128], index: 0, kind: input, shape index: {}]   ;;  %s217_s1 = inlined_call_operand.hbm [shape: f32[2,128], index: 1, kind: input, shape index: {}]   ;;  %s218_s2 = inlined_call_operand.vmem [shape: f32[8,16], index: 2, kind: input, shape index: {}]   ;;  %s219_s3 = inlined_call_operand.vmem [shape: s32[8,1], index: 3, kind: input, shape index: {}]   ;;  %s220_s4 = inlined_call_operand.hbm [shape: f32[1,8,128], index: 4, kind: output, shape index: {}]  }
   0x1   :  { %10 = vsyncpa [#allocation4], 0  ;;  %s18_s17 = sshll.u32 %s217_s1, 4  ;;  %s170_s18 = smov [#allocation2]   ;;  %s19_s17 = int_to_ptr.hbm [resolvable:$true] %s18_s17 }
   0x2   :  { %s20_s19 = sshll.u32 %s170_s18, 4  ;;  %s21_s19 = int_to_ptr.vmem [resolvable:$true] %s20_s19 }
   0x3   :  { %23 = dma.hbm_to_vmem [thread:$0]  %s19_s17, 32, %s21_s19, [#allocation3]  }
   0x4   :  { %166 = dma.done.wait [#allocation3], 32  }
   0x5   :  { %167 = vsyncadd [#allocation3], 4294967264  ;;  %v171_v0 = vmov 0   ;;  %vm37_vm0 = vcmask 130048   ;;  %v36_v1 = vld [vmem:[%s218_s2] sm:$0xff]  ;;  %v50_v9 = vlaneseq  ;;  %vm62_vm2 = vcmask 1041408  }
   0x6   :  { %113 = vset.pattern.permute.xlu0 %v171_v0  ;;  %v38_v2 = vsel %vm37_vm0, %v36_v1, -inf  ;;  %v52_v3 = vld [vmem:[%s219_s3] sm:$0xff]  ;;  %vm73_vm3 = vcmask 7168   ;;  %s96_s27 = sshll.u32 %s220_s4, 4  ;;  %s97_s27 = int_to_ptr.hbm [resolvable:$true] %s96_s27 }
   0x7   :  { %39 = vmax.xlane.f32.xlu0 %v38_v2  ;;  %v51_v10 = vand.u32 127, %v50_v9  ;;  %v32_v14 = vld [vmem:[%s216_s0] sm:$0x3]  ;;  %s172_s0 = smov [#allocation5]  }
   0x8   :  { %v33_v15 = vld [vmem:[#allocation2] sm:$0x3]  ;;  %s94_s3 = sshll.u32 %s172_s0, 4  ;;  %s95_s3 = int_to_ptr.vmem [resolvable:$true] %s94_s3 }
   0x9   :  { %v34_v16 = vsub.f32 %v32_v14, %v33_v15  ;;  %vm84_vm4 = vcmp.eq.s32.totalorder %v51_v10, 0 }
   0xb   :  { %v35_v17 = vmul.f32 %v34_v16, %v34_v16 }
   0xd   :  { %v63_v18 = vsel %vm62_vm2, %v35_v17, 0.0 }
   0xe   :  { %64 = vadd.xlane.f32.xlu2 %v63_v18 }
  0x1b   :  { %54 = vperm.xlu0 %113, %v52_v3  }
  0x7a   :  { %v40_v4 = vpop.xlane.xlu0 %39 }
  0x7b   :  { %v41_v5 = vsub.f32 %v36_v1, %v40_v4 }
  0x7d   :  { %v42_v6 = vmul.f32 1.442695, %v41_v5 }
  0x7f   :  { %114 = vpow2.f32 %v42_v6 }
  0x81   :  { %v65_v26 = vpop.xlane.xlu2 %64 }
  0x82   :  { %v66_v27 = vrot.slane %v65_v26, 4 }
  0x84   :  { %v67_v28 = vadd.f32 %v66_v27, %v65_v26 }
  0x85   :  { %v115_v7 = vpop.eup %114 }
  0x86   :  { %v44_v8 = vsel %vm37_vm0, %v115_v7, 0.0  ;;  %v68_v29 = vrot.slane %v67_v28, 2 }
  0x87   :  { %45 = vadd.xlane.f32.xlu1 %v44_v8 }
  0x88   :  { %v69_v30 = vadd.f32 %v68_v29, %v67_v28 }
  0x8a   :  { %v70_v31 = vrot.slane %v69_v30, 1 }
  0x8c   :  { %v71_v32 = vadd.f32 %v70_v31, %v69_v30 }
  0x8d   :  { %v55_v11 = vpop.permute.xlu0 %54 }
  0x8e   :  { %vm56_vm1 = vcmp.eq.s32.totalorder %v51_v10, %v55_v11  ;;  %106 = vpush %v71_v32 }
  0x8f   :  { %v57_v12 = vsel %vm56_vm1, %v36_v1, 0.0 }
  0x90   :  { %v58_v13 = vsel %vm37_vm0, %v57_v12, 0.0 }
  0x91   :  { %59 = vadd.xlane.f32.xlu1 %v58_v13 }
  0xbf   :  { %s107_s24 = spop %106 }
  0xc0   :  { %v85_v40 = vstv %s107_s24 }
  0xfa   :  { %v46_v19 = vpop.xlane.xlu1 %45 }
  0xfb   :  { %116 = vlog2.f32 %v46_v19 }
 0x101   :  { %v117_v20 = vpop.eup %116 }
 0x102   :  { %v48_v21 = vmul.f32 0.6931472, %v117_v20 }
 0x104   :  { %v49_v22 = vadd.f32 %v48_v21, %v40_v4  ;;  %v60_v23 = vpop.xlane.xlu1 %59 }
 0x106   :  { %v61_v24 = vsub.f32 %v49_v22, %v60_v23 }
 0x108   :  { %v74_v25 = vsel %vm73_vm3, %v61_v24, 0.0 }
 0x109   :  { %75 = vadd.xlane.f32.xlu2 %v74_v25 }
 0x17c   :  { %v76_v33 = vpop.xlane.xlu2 %75 }
 0x17d   :  { %v77_v34 = vrot.slane %v76_v33, 4 }
 0x17f   :  { %v78_v35 = vadd.f32 %v77_v34, %v76_v33 }
 0x181   :  { %v79_v36 = vrot.slane %v78_v35, 2 }
 0x183   :  { %v80_v37 = vadd.f32 %v79_v36, %v78_v35 }
 0x185   :  { %v81_v38 = vrot.slane %v80_v37, 1 }
 0x187   :  { %v82_v39 = vadd.f32 %v81_v38, %v80_v37 }
 0x189   :  { %108 = vpush %v82_v39 }
 0x1ba   :  { %s109_s28 = spop %108 }
 0x1bb   :  { %v86_v41 = vstv %s109_s28 }
 0x1bc   :  { %v87_v42 = vsel %vm84_vm4, %v85_v40, %v86_v41 }
 0x1bd   :  { %88 = vst [vmem:[#allocation5] sm:$0xff] %v87_v42 }
 0x1be   :  { %99 = dma.vmem_to_hbm [thread:$0]  %s95_s3, 128, %s97_s27, [#allocation4]  }
 0x1bf   :  { %168 = dma.done.wait [#allocation4], 128  }
 0x1c0   :  { %169 = vsyncadd [#allocation4], 4294967168 }
 0x1c1   :  { %104 = vsyncpa [#allocation3], 1 }
 0x1c2   :  { %105 = vsyncpa [#allocation4], 1 }

</bundles_post_ra>
